<compile_context>
chip_gen: v7x
topology: tpu7x:2x2x1
jax: 0.10.0
libtpu: 0.0.40
codegen_flags: <defaults>
</compile_context>

<pallas_src>
import jax
import jax.numpy as jnp
from jax.experimental import pallas as pl
from jax.experimental.pallas import tpu as pltpu


def _subfold_kernel(seed_ref, xp_ref,
                    w1sa_ref, w1sb_ref, wfeat_ref, b1a_ref, b1b_ref,
                    w2a_ref, b2a_ref, w3a_ref, b3a_ref,
                    w2b_ref, b2b_ref, w3b_ref, b3b_ref,
                    out_ref):
    hidden = b1a_ref.shape[1]

    seed = seed_ref[...]                 # (tile_p, 3)        bf16
    xp = xp_ref[...]                     # (tile_p, in_ch)    bf16

    # Shared feature half of layer 1 for BOTH branches: one (K=in_ch, N=2H)
    # MXU pass instead of two concat+matmul passes.
    zx = jnp.dot(xp, wfeat_ref[...], preferred_element_type=jnp.float32)

    def tail(h1_f32, w2_ref, b2_ref, w3_ref, b3_ref):
        # ReLU -> [conv1x1 + folded BN -> ReLU] -> conv1x1 (all per-point matmuls).
        h = jnp.maximum(h1_f32, 0.0)
        h = jnp.dot(h.astype(jnp.bfloat16), w2_ref[...],
                    preferred_element_type=jnp.float32) + b2_ref[...]
        h = jnp.maximum(h, 0.0)
        return jnp.dot(h.astype(jnp.bfloat16), w3_ref[...],
                       preferred_element_type=jnp.float32) + b3_ref[...]

    # Branch 1: layer 1 = seed @ W1a[:3] + (features @ W1a[3:]) + b1a
    h1a = (jnp.dot(seed, w1sa_ref[...], preferred_element_type=jnp.float32)
           + zx[:, :hidden] + b1a_ref[...])
    fd1 = tail(h1a, w2a_ref, b2a_ref, w3a_ref, b3a_ref)

    # Branch 2: layer 1 = fd1 @ W1b[:3] + (features @ W1b[3:]) + b1b
    h1b = (jnp.dot(fd1.astype(jnp.bfloat16), w1sb_ref[...],
                   preferred_element_type=jnp.float32)
           + zx[:, hidden:] + b1b_ref[...])
    fd2 = tail(h1b, w2b_ref, b2b_ref, w3b_ref, b3b_ref)

    out_ref[...] = fd2.astype(out_ref.dtype)


def _fold_bn_into_conv(w, b, gamma, beta, mean, var, eps=1e-5):
    """w: (C_out, C_in) 1x1-conv weight, b: (C_out,). Returns (W^T f32, bias (1,C_out) f32)."""
    scale = gamma / jnp.sqrt(var + eps)
    w_f = w * scale[:, None]
    b_f = (b - mean) * scale + beta
    return w_f.T, b_f[None, :]


def _pick_tile_p(P, tile_rows):
    """Rows per grid step: divides P, multiple of 8 (sublane legality), capped
    at tile_rows and at P // 2 so the grid has >= 2 steps (v7x megacore)."""
    if P % 8 != 0 or P < 16:
        return P                    # block_shape == full array is always legal
    cap = min(tile_rows, max(8, P // 2))
    t = (cap // 8) * 8
    while t >= 8:
        if P % t == 0:
            return t
        t -= 8
    return P


def init_subfold_params(key, in_channel, hidden_dim):
    def conv(k, cin, cout):
        kw, kb = jax.random.split(k)
        w = jax.random.normal(kw, (cout, cin), jnp.float32) * 0.1
        b = jax.random.normal(kb, (cout,), jnp.float32) * 0.01
        return w, b

    def bn(k, c):
        k1, k2, k3 = jax.random.split(k, 3)
        gamma = 1.0 + 0.1 * jax.random.normal(k1, (c,), jnp.float32)
        beta = 0.1 * jax.random.normal(k2, (c,), jnp.float32)
        mean = 0.1 * jax.random.normal(k3, (c,), jnp.float32)
        var = jnp.ones((c,), jnp.float32)
        return gamma, beta, mean, var

    ks = jax.random.split(key, 10)
    p = {}
    p["f1_c1"] = conv(ks[0], in_channel + 3, hidden_dim)
    p["f1_bn1"] = bn(ks[1], hidden_dim)
    p["f1_c2"] = conv(ks[2], hidden_dim, hidden_dim // 2)
    p["f1_bn2"] = bn(ks[3], hidden_dim // 2)
    p["f1_c3"] = conv(ks[4], hidden_dim // 2, 3)
    p["f2_c1"] = conv(ks[5], in_channel + 3, hidden_dim)
    p["f2_bn1"] = bn(ks[6], hidden_dim)
    p["f2_c2"] = conv(ks[7], hidden_dim, hidden_dim // 2)
    p["f2_bn2"] = bn(ks[8], hidden_dim // 2)
    p["f2_c3"] = conv(ks[9], hidden_dim // 2, 3)
    return p


def subfold_forward(x, c, params, in_channel, step, *, tile_rows=4096):
    """x: (bs, in_channel)   c: (bs, 3, num_sample)   ->   (bs, 3, num_sample)"""
    num_sample = step * step
    bs = x.shape[0]
    P = bs * num_sample
    hidden = params["f1_c1"][0].shape[0]

    tile_p = _pick_tile_p(P, tile_rows)
    grid = (P // tile_p,)

    # Glue: point-major seed; features repeated per point in HBM (cheap vs the
    # MXU work) and streamed with the same (tile_p, C) indexing as the seed.
    seed2d = jnp.transpose(c, (0, 2, 1)).reshape(P, 3).astype(jnp.bfloat16)
    xp = jnp.repeat(x.astype(jnp.bfloat16), num_sample, axis=0)      # (P, in_ch)

    # Fold BN (eval semantics) into the 1x1 convs; weights -> (C_in, C_out).
    def branch(prefix):
        w1, b1 = params[prefix + "_c1"]
        w1t, b1t = _fold_bn_into_conv(w1, b1, *params[prefix + "_bn1"])
        w2, b2 = params[prefix + "_c2"]
        w2t, b2t = _fold_bn_into_conv(w2, b2, *params[prefix + "_bn2"])
        w3, b3 = params[prefix + "_c3"]
        return (w1t, b1t,
                w2t.astype(jnp.bfloat16), b2t,
                w3.T.astype(jnp.bfloat16), b3[None, :])

    w1ta, b1a, w2a, b2a, w3a, b3a = branch("f1")
    w1tb, b1b, w2b, b2b, w3b, b3b = branch("f2")

    # Seed halves of layer 1 (K=3), and the fused feature half for both
    # branches: (in_channel, 2*hidden).
    w1sa = w1ta[:3, :].astype(jnp.bfloat16)
    w1sb = w1tb[:3, :].astype(jnp.bfloat16)
    wfeat = jnp.concatenate([w1ta[3:, :], w1tb[3:, :]], axis=1).astype(jnp.bfloat16)

    args = (seed2d, xp,
            w1sa, w1sb, wfeat, b1a, b1b,
            w2a, b2a, w3a, b3a,
            w2b, b2b, w3b, b3b)

    def inv(a):  # grid-invariant full block (weights / biases)
        return pl.BlockSpec(a.shape, lambda i: (0, 0))

    in_specs = [
        pl.BlockSpec((tile_p, 3), lambda i: (i, 0)),            # seed, streamed
        pl.BlockSpec((tile_p, in_channel), lambda i: (i, 0)),   # per-point feats
    ] + [inv(a) for a in args[2:]]

    flops = 2 * P * (2 * 3 * hidden                      # seed / fd1 halves of layer 1
                     + in_channel * 2 * hidden           # shared feature half
                     + 2 * (hidden * (hidden // 2)       # layer 2, both branches
                            + (hidden // 2) * 3))        # layer 3, both branches
    bytes_accessed = sum(int(a.size) * a.dtype.itemsize for a in args) + P * 3 * 4

    out = pl.pallas_call(
        _subfold_kernel,
        out_shape=jax.ShapeDtypeStruct((P, 3), jnp.float32),
        grid=grid,
        in_specs=in_specs,
        out_specs=pl.BlockSpec((tile_p, 3), lambda i: (i, 0)),
        compiler_params=pltpu.CompilerParams(
            dimension_semantics=("parallel",),        # megacore sharding on v7x
            vmem_limit_bytes=32 << 20,                # v7x-safe scoped VMEM
        ),
        cost_estimate=pl.CostEstimate(
            flops=int(flops), transcendentals=0,
            bytes_accessed=int(bytes_accessed)),
    )(*args)

    # Glue: back to PyTorch's (bs, 3, num_sample) layout.
    return out.reshape(bs, num_sample, 3).transpose(0, 2, 1)


def _reference(x, c, params, in_channel, step):
    """Pure-JAX f32 reference mirroring the PyTorch forward (eval-mode BN)."""
    num_sample = step * step
    bs = x.shape[0]
    feats = jnp.broadcast_to(x[:, :, None], (bs, in_channel, num_sample))

    def conv1x1(h, w, b):  # h: (bs, Cin, N), w: (Cout, Cin)
        return jnp.einsum("oc,bcn->bon", w, h) + b[None, :, None]

    def bn(h, gamma, beta, mean, var, eps=1e-5):
        s = gamma / jnp.sqrt(var + eps)
        return s[None, :, None] * (h - mean[None, :, None]) + beta[None, :, None]

    def folding(h, prefix):
        h = conv1x1(h, *params[prefix + "_c1"])
        h = jax.nn.relu(bn(h, *params[prefix + "_bn1"]))
        h = conv1x1(h, *params[prefix + "_c2"])
        h = jax.nn.relu(bn(h, *params[prefix + "_bn2"]))
        return conv1x1(h, *params[prefix + "_c3"])

    h = jnp.concatenate([c, feats], axis=1)
    fd1 = folding(h, "f1")
    h = jnp.concatenate([fd1, feats], axis=1)
    return folding(h, "f2")


if __name__ == "__main__":
    in_channel = 8
    step = 4                 # num_sample = 16
    hidden_dim = 64
    bs = 16                  # P = 256 points

    key = jax.random.PRNGKey(0)
    kx, kc, kp = jax.random.split(key, 3)
    x = jax.random.normal(kx, (bs, in_channel), jnp.float32)
    c = jax.random.normal(kc, (bs, 3, step * step), jnp.float32)
    params = init_subfold_params(kp, in_channel, hidden_dim)

    # P=256 -> tile_p capped at P//2=128 -> grid=(2,): exercises the pipelined,
    # megacore-shardable grid.
    out = subfold_forward(x, c, params, in_channel, step)
    out = jax.block_until_ready(out)

    ref = _reference(x, c, params, in_channel, step)
    assert out.shape == (bs, 3, step * step), out.shape
    err = float(jnp.max(jnp.abs(out - ref)))
    # bf16 MXU inputs (f32 accumulation) -> loosened tolerance vs the f32 reference.
    assert jnp.allclose(out, ref, atol=5e-2, rtol=5e-2), err

    print("KERNEL_OK")
</pallas_src>

<mosaic_0001>
module attributes {stable_mosaic.version = 11 : i64} {
  func.func @_subfold_kernel(%arg0: i32, %arg1: memref<128x3xbf16, #tpu.memory_space<vmem>>, %arg2: memref<128x8xbf16, #tpu.memory_space<vmem>>, %arg3: memref<3x64xbf16, #tpu.memory_space<vmem>>, %arg4: memref<3x64xbf16, #tpu.memory_space<vmem>>, %arg5: memref<8x128xbf16, #tpu.memory_space<vmem>>, %arg6: memref<1x64xf32, #tpu.memory_space<vmem>>, %arg7: memref<1x64xf32, #tpu.memory_space<vmem>>, %arg8: memref<64x32xbf16, #tpu.memory_space<vmem>>, %arg9: memref<1x32xf32, #tpu.memory_space<vmem>>, %arg10: memref<32x3xbf16, #tpu.memory_space<vmem>>, %arg11: memref<1x3xf32, #tpu.memory_space<vmem>>, %arg12: memref<64x32xbf16, #tpu.memory_space<vmem>>, %arg13: memref<1x32xf32, #tpu.memory_space<vmem>>, %arg14: memref<32x3xbf16, #tpu.memory_space<vmem>>, %arg15: memref<1x3xf32, #tpu.memory_space<vmem>>, %arg16: memref<128x3xf32, #tpu.memory_space<vmem>>) attributes {dimension_semantics = [#tpu.dimension_semantics<parallel>], iteration_bounds = array<i64: 2>, scalar_prefetch = 0 : i64, scratch_operands = 0 : i64, tpu.core_type = #tpu.core_type<tc>, window_params = [{transform_indices = @transform_0, window_bounds = array<i64: 128, 3>}, {transform_indices = @transform_1, window_bounds = array<i64: 128, 8>}, {pipeline_mode = #tpu.pipeline_mode<synchronous>, transform_indices = @transform_2, window_bounds = array<i64: 3, 64>}, {pipeline_mode = #tpu.pipeline_mode<synchronous>, transform_indices = @transform_3, window_bounds = array<i64: 3, 64>}, {pipeline_mode = #tpu.pipeline_mode<synchronous>, transform_indices = @transform_4, window_bounds = array<i64: 8, 128>}, {pipeline_mode = #tpu.pipeline_mode<synchronous>, transform_indices = @transform_5, window_bounds = array<i64: 1, 64>}, {pipeline_mode = #tpu.pipeline_mode<synchronous>, transform_indices = @transform_6, window_bounds = array<i64: 1, 64>}, {pipeline_mode = #tpu.pipeline_mode<synchronous>, transform_indices = @transform_7, window_bounds = array<i64: 64, 32>}, {pipeline_mode = #tpu.pipeline_mode<synchronous>, transform_indices = @transform_8, window_bounds = array<i64: 1, 32>}, {pipeline_mode = #tpu.pipeline_mode<synchronous>, transform_indices = @transform_9, window_bounds = array<i64: 32, 3>}, {pipeline_mode = #tpu.pipeline_mode<synchronous>, transform_indices = @transform_10, window_bounds = array<i64: 1, 3>}, {pipeline_mode = #tpu.pipeline_mode<synchronous>, transform_indices = @transform_11, window_bounds = array<i64: 64, 32>}, {pipeline_mode = #tpu.pipeline_mode<synchronous>, transform_indices = @transform_12, window_bounds = array<i64: 1, 32>}, {pipeline_mode = #tpu.pipeline_mode<synchronous>, transform_indices = @transform_13, window_bounds = array<i64: 32, 3>}, {pipeline_mode = #tpu.pipeline_mode<synchronous>, transform_indices = @transform_14, window_bounds = array<i64: 1, 3>}, {transform_indices = @transform_15, window_bounds = array<i64: 128, 3>}]} {
    %c0 = arith.constant 0 : index
    %c0_0 = arith.constant 0 : index
    %0 = vector.load %arg1[%c0, %c0_0] : memref<128x3xbf16, #tpu.memory_space<vmem>>, vector<128x3xbf16>
    %c0_1 = arith.constant 0 : index
    %c0_2 = arith.constant 0 : index
    %1 = vector.load %arg2[%c0_1, %c0_2] : memref<128x8xbf16, #tpu.memory_space<vmem>>, vector<128x8xbf16>
    %c0_3 = arith.constant 0 : index
    %c0_4 = arith.constant 0 : index
    %2 = vector.load %arg5[%c0_3, %c0_4] : memref<8x128xbf16, #tpu.memory_space<vmem>>, vector<8x128xbf16>
    %cst = arith.constant dense<0.000000e+00> : vector<128x128xf32>
    %3 = tpu.matmul %1, %2, %cst {dimension_numbers = #tpu.dot_dimension_numbers<[1], [0], [0], [1], [0, 0, 1, 1], [], []>} : vector<128x8xbf16>, vector<8x128xbf16>, vector<128x128xf32> -> vector<128x128xf32>
    %c0_5 = arith.constant 0 : index
    %c0_6 = arith.constant 0 : index
    %4 = vector.load %arg3[%c0_5, %c0_6] : memref<3x64xbf16, #tpu.memory_space<vmem>>, vector<3x64xbf16>
    %cst_7 = arith.constant dense<0.000000e+00> : vector<128x64xf32>
    %5 = tpu.matmul %0, %4, %cst_7 {dimension_numbers = #tpu.dot_dimension_numbers<[1], [0], [0], [1], [0, 0, 1, 1], [], []>} : vector<128x3xbf16>, vector<3x64xbf16>, vector<128x64xf32> -> vector<128x64xf32>
    %6 = vector.extract_strided_slice %3 {offsets = [0, 0], sizes = [128, 64], strides = [1, 1]} : vector<128x128xf32> to vector<128x64xf32>
    %7 = arith.addf %5, %6 : vector<128x64xf32>
    %c0_8 = arith.constant 0 : index
    %c0_9 = arith.constant 0 : index
    %8 = vector.load %arg6[%c0_8, %c0_9] : memref<1x64xf32, #tpu.memory_space<vmem>>, vector<1x64xf32>
    %9 = vector.broadcast %8 : vector<1x64xf32> to vector<128x64xf32>
    %10 = arith.addf %7, %9 : vector<128x64xf32>
    %cst_10 = arith.constant 0.000000e+00 : f32
    %11 = vector.broadcast %cst_10 : f32 to vector<128x64xf32>
    %12 = arith.maximumf %10, %11 : vector<128x64xf32>
    %13 = arith.truncf %12 : vector<128x64xf32> to vector<128x64xbf16>
    %c0_11 = arith.constant 0 : index
    %c0_12 = arith.constant 0 : index
    %14 = vector.load %arg8[%c0_11, %c0_12] : memref<64x32xbf16, #tpu.memory_space<vmem>>, vector<64x32xbf16>
    %cst_13 = arith.constant dense<0.000000e+00> : vector<128x32xf32>
    %15 = tpu.matmul %13, %14, %cst_13 {dimension_numbers = #tpu.dot_dimension_numbers<[1], [0], [0], [1], [0, 0, 1, 1], [], []>} : vector<128x64xbf16>, vector<64x32xbf16>, vector<128x32xf32> -> vector<128x32xf32>
    %c0_14 = arith.constant 0 : index
    %c0_15 = arith.constant 0 : index
    %16 = vector.load %arg9[%c0_14, %c0_15] : memref<1x32xf32, #tpu.memory_space<vmem>>, vector<1x32xf32>
    %17 = vector.broadcast %16 : vector<1x32xf32> to vector<128x32xf32>
    %18 = arith.addf %15, %17 : vector<128x32xf32>
    %cst_16 = arith.constant 0.000000e+00 : f32
    %19 = vector.broadcast %cst_16 : f32 to vector<128x32xf32>
    %20 = arith.maximumf %18, %19 : vector<128x32xf32>
    %21 = arith.truncf %20 : vector<128x32xf32> to vector<128x32xbf16>
    %c0_17 = arith.constant 0 : index
    %c0_18 = arith.constant 0 : index
    %22 = vector.load %arg10[%c0_17, %c0_18] : memref<32x3xbf16, #tpu.memory_space<vmem>>, vector<32x3xbf16>
    %cst_19 = arith.constant dense<0.000000e+00> : vector<128x3xf32>
    %23 = tpu.matmul %21, %22, %cst_19 {dimension_numbers = #tpu.dot_dimension_numbers<[1], [0], [0], [1], [0, 0, 1, 1], [], []>} : vector<128x32xbf16>, vector<32x3xbf16>, vector<128x3xf32> -> vector<128x3xf32>
    %c0_20 = arith.constant 0 : index
    %c0_21 = arith.constant 0 : index
    %24 = vector.load %arg11[%c0_20, %c0_21] : memref<1x3xf32, #tpu.memory_space<vmem>>, vector<1x3xf32>
    %25 = vector.broadcast %24 : vector<1x3xf32> to vector<128x3xf32>
    %26 = arith.addf %23, %25 : vector<128x3xf32>
    %27 = arith.truncf %26 : vector<128x3xf32> to vector<128x3xbf16>
    %c0_22 = arith.constant 0 : index
    %c0_23 = arith.constant 0 : index
    %28 = vector.load %arg4[%c0_22, %c0_23] : memref<3x64xbf16, #tpu.memory_space<vmem>>, vector<3x64xbf16>
    %cst_24 = arith.constant dense<0.000000e+00> : vector<128x64xf32>
    %29 = tpu.matmul %27, %28, %cst_24 {dimension_numbers = #tpu.dot_dimension_numbers<[1], [0], [0], [1], [0, 0, 1, 1], [], []>} : vector<128x3xbf16>, vector<3x64xbf16>, vector<128x64xf32> -> vector<128x64xf32>
    %30 = vector.extract_strided_slice %3 {offsets = [0, 64], sizes = [128, 64], strides = [1, 1]} : vector<128x128xf32> to vector<128x64xf32>
    %31 = arith.addf %29, %30 : vector<128x64xf32>
    %c0_25 = arith.constant 0 : index
    %c0_26 = arith.constant 0 : index
    %32 = vector.load %arg7[%c0_25, %c0_26] : memref<1x64xf32, #tpu.memory_space<vmem>>, vector<1x64xf32>
    %33 = vector.broadcast %32 : vector<1x64xf32> to vector<128x64xf32>
    %34 = arith.addf %31, %33 : vector<128x64xf32>
    %cst_27 = arith.constant 0.000000e+00 : f32
    %35 = vector.broadcast %cst_27 : f32 to vector<128x64xf32>
    %36 = arith.maximumf %34, %35 : vector<128x64xf32>
    %37 = arith.truncf %36 : vector<128x64xf32> to vector<128x64xbf16>
    %c0_28 = arith.constant 0 : index
    %c0_29 = arith.constant 0 : index
    %38 = vector.load %arg12[%c0_28, %c0_29] : memref<64x32xbf16, #tpu.memory_space<vmem>>, vector<64x32xbf16>
    %cst_30 = arith.constant dense<0.000000e+00> : vector<128x32xf32>
    %39 = tpu.matmul %37, %38, %cst_30 {dimension_numbers = #tpu.dot_dimension_numbers<[1], [0], [0], [1], [0, 0, 1, 1], [], []>} : vector<128x64xbf16>, vector<64x32xbf16>, vector<128x32xf32> -> vector<128x32xf32>
    %c0_31 = arith.constant 0 : index
    %c0_32 = arith.constant 0 : index
    %40 = vector.load %arg13[%c0_31, %c0_32] : memref<1x32xf32, #tpu.memory_space<vmem>>, vector<1x32xf32>
    %41 = vector.broadcast %40 : vector<1x32xf32> to vector<128x32xf32>
    %42 = arith.addf %39, %41 : vector<128x32xf32>
    %cst_33 = arith.constant 0.000000e+00 : f32
    %43 = vector.broadcast %cst_33 : f32 to vector<128x32xf32>
    %44 = arith.maximumf %42, %43 : vector<128x32xf32>
    %45 = arith.truncf %44 : vector<128x32xf32> to vector<128x32xbf16>
    %c0_34 = arith.constant 0 : index
    %c0_35 = arith.constant 0 : index
    %46 = vector.load %arg14[%c0_34, %c0_35] : memref<32x3xbf16, #tpu.memory_space<vmem>>, vector<32x3xbf16>
    %cst_36 = arith.constant dense<0.000000e+00> : vector<128x3xf32>
    %47 = tpu.matmul %45, %46, %cst_36 {dimension_numbers = #tpu.dot_dimension_numbers<[1], [0], [0], [1], [0, 0, 1, 1], [], []>} : vector<128x32xbf16>, vector<32x3xbf16>, vector<128x3xf32> -> vector<128x3xf32>
    %c0_37 = arith.constant 0 : index
    %c0_38 = arith.constant 0 : index
    %48 = vector.load %arg15[%c0_37, %c0_38] : memref<1x3xf32, #tpu.memory_space<vmem>>, vector<1x3xf32>
    %49 = vector.broadcast %48 : vector<1x3xf32> to vector<128x3xf32>
    %50 = arith.addf %47, %49 : vector<128x3xf32>
    %c0_39 = arith.constant 0 : index
    %c0_40 = arith.constant 0 : index
    %51 = vector.load %arg16[%c0_39, %c0_40] : memref<128x3xf32, #tpu.memory_space<vmem>>, vector<128x3xf32>
    tpu.vector_store %arg16[%c0_39, %c0_40], %50 {strides = array<i32>} : memref<128x3xf32, #tpu.memory_space<vmem>>, vector<128x3xf32>,
    return
  }
  func.func @transform_0(%arg0: i32) -> (i32, i32) {
    %c0_i32 = arith.constant 0 : i32
    %c0_i32_0 = arith.constant 0 : i32
    return %arg0, %c0_i32 : i32, i32
  }
  func.func @transform_1(%arg0: i32) -> (i32, i32) {
    %c0_i32 = arith.constant 0 : i32
    %c0_i32_0 = arith.constant 0 : i32
    return %arg0, %c0_i32 : i32, i32
  }
  func.func @transform_2(%arg0: i32) -> (i32, i32) {
    %c0_i32 = arith.constant 0 : i32
    %c0_i32_0 = arith.constant 0 : i32
    %c0_i32_1 = arith.constant 0 : i32
    return %c0_i32, %c0_i32_0 : i32, i32
  }
  func.func @transform_3(%arg0: i32) -> (i32, i32) {
    %c0_i32 = arith.constant 0 : i32
    %c0_i32_0 = arith.constant 0 : i32
    %c0_i32_1 = arith.constant 0 : i32
    return %c0_i32, %c0_i32_0 : i32, i32
  }
  func.func @transform_4(%arg0: i32) -> (i32, i32) {
    %c0_i32 = arith.constant 0 : i32
    %c0_i32_0 = arith.constant 0 : i32
    %c0_i32_1 = arith.constant 0 : i32
    return %c0_i32, %c0_i32_0 : i32, i32
  }
  func.func @transform_5(%arg0: i32) -> (i32, i32) {
    %c0_i32 = arith.constant 0 : i32
    %c0_i32_0 = arith.constant 0 : i32
    %c0_i32_1 = arith.constant 0 : i32
    return %c0_i32, %c0_i32_0 : i32, i32
  }
  func.func @transform_6(%arg0: i32) -> (i32, i32) {
    %c0_i32 = arith.constant 0 : i32
    %c0_i32_0 = arith.constant 0 : i32
    %c0_i32_1 = arith.constant 0 : i32
    return %c0_i32, %c0_i32_0 : i32, i32
  }
  func.func @transform_7(%arg0: i32) -> (i32, i32) {
    %c0_i32 = arith.constant 0 : i32
    %c0_i32_0 = arith.constant 0 : i32
    %c0_i32_1 = arith.constant 0 : i32
    return %c0_i32, %c0_i32_0 : i32, i32
  }
  func.func @transform_8(%arg0: i32) -> (i32, i32) {
    %c0_i32 = arith.constant 0 : i32
    %c0_i32_0 = arith.constant 0 : i32
    %c0_i32_1 = arith.constant 0 : i32
    return %c0_i32, %c0_i32_0 : i32, i32
  }
  func.func @transform_9(%arg0: i32) -> (i32, i32) {
    %c0_i32 = arith.constant 0 : i32
    %c0_i32_0 = arith.constant 0 : i32
    %c0_i32_1 = arith.constant 0 : i32
    return %c0_i32, %c0_i32_0 : i32, i32
  }
  func.func @transform_10(%arg0: i32) -> (i32, i32) {
    %c0_i32 = arith.constant 0 : i32
    %c0_i32_0 = arith.constant 0 : i32
    %c0_i32_1 = arith.constant 0 : i32
    return %c0_i32, %c0_i32_0 : i32, i32
  }
  func.func @transform_11(%arg0: i32) -> (i32, i32) {
    %c0_i32 = arith.constant 0 : i32
    %c0_i32_0 = arith.constant 0 : i32
    %c0_i32_1 = arith.constant 0 : i32
    return %c0_i32, %c0_i32_0 : i32, i32
  }
  func.func @transform_12(%arg0: i32) -> (i32, i32) {
    %c0_i32 = arith.constant 0 : i32
    %c0_i32_0 = arith.constant 0 : i32
    %c0_i32_1 = arith.constant 0 : i32
    return %c0_i32, %c0_i32_0 : i32, i32
  }
  func.func @transform_13(%arg0: i32) -> (i32, i32) {
    %c0_i32 = arith.constant 0 : i32
    %c0_i32_0 = arith.constant 0 : i32
    %c0_i32_1 = arith.constant 0 : i32
    return %c0_i32, %c0_i32_0 : i32, i32
  }
  func.func @transform_14(%arg0: i32) -> (i32, i32) {
    %c0_i32 = arith.constant 0 : i32
    %c0_i32_0 = arith.constant 0 : i32
    %c0_i32_1 = arith.constant 0 : i32
    return %c0_i32, %c0_i32_0 : i32, i32
  }
  func.func @transform_15(%arg0: i32) -> (i32, i32) {
    %c0_i32 = arith.constant 0 : i32
    %c0_i32_0 = arith.constant 0 : i32
    return %arg0, %c0_i32 : i32, i32
  }
}

</mosaic_0001>

<bundles_post_ra>
// kernel: tpu_custom_call.1
= control target key start
LH: loop header
LB: loop body
LE: loop exit
PB: predicated region body
PF: predicated region fallthrough
CT: control target
= control target key end

     0   :  { %s2371_s18 = smov 0   ;;  %s2636_s0 = inlined_call_operand.vmem [shape: bf16[256,3], index: 0, kind: input, shape index: {}]   ;;  %s2637_s1 = inlined_call_operand.vmem [shape: bf16[256,8], index: 1, kind: input, shape index: {}]   ;;  %s2638_s2 = inlined_call_operand.vmem [shape: bf16[3,64], index: 2, kind: input, shape index: {}]   ;;  %s2639_s3 = inlined_call_operand.vmem [shape: bf16[3,64], index: 3, kind: input, shape index: {}]   ;;  %s2640_s4 = inlined_call_operand.vmem [shape: bf16[8,128], index: 4, kind: input, shape index: {}]   ;;  %s2641_s5 = inlined_call_operand.vmem [shape: f32[1,64], index: 5, kind: input, shape index: {}]   ;;  %s2642_s6 = inlined_call_operand.vmem [shape: f32[1,64], index: 6, kind: input, shape index: {}]   ;;  %s2643_s7 = inlined_call_operand.vmem [shape: bf16[64,32], index: 7, kind: input, shape index: {}]   ;;  %s2644_s8 = inlined_call_operand.vmem [shape: f32[1,32], index: 8, kind: input, shape index: {}]   ;;  %s2645_s9 = inlined_call_operand.vmem [shape: bf16[32,3], index: 9, kind: input, shape index: {}]   ;;  %s2646_s10 = inlined_call_operand.vmem [shape: f32[1,3], index: 10, kind: input, shape index: {}]   ;;  %s2647_s11 = inlined_call_operand.vmem [shape: bf16[64,32], index: 11, kind: input, shape index: {}]   ;;  %s2648_s12 = inlined_call_operand.vmem [shape: f32[1,32], index: 12, kind: input, shape index: {}]   ;;  %s2649_s13 = inlined_call_operand.vmem [shape: bf16[32,3], index: 13, kind: input, shape index: {}]   ;;  %s2650_s14 = inlined_call_operand.vmem [shape: f32[1,3], index: 14, kind: input, shape index: {}]   ;;  %s2651_s15 = inlined_call_operand.vmem [shape: f32[256,3], index: 15, kind: output, shape index: {}]  }
   0x1 LB: > { %s1923_s19 = sadd.s32 4294967295, %s2287_s18   ;;  %p1927_p0 = scmp.ge.s32.totalorder %s2287_s18, 1  ;;  %s2287_s18 = sphi %s2371_s18, %s25_s18  }
   0x2   : > { %p449_p1 = scmp.lt.s32.totalorder %s2287_s18, 3 }
   0x4   : > { %p450_p2 = pnand %p1927_p0, %p449_p1 }
   0x5   : > { %v553_v0 = vld [vmem:[%s2640_s4] sm:$0xf] (!%p450_p2)  ;;  %vm619_vm0 = vcmask (!%p450_p2), 1043456   ;;  %s1928_s22 = sshll.u32 (!%p450_p2), %s1923_s19, 4  ;;  %vm786_vm1 = vcmask (!%p450_p2), 1040384   ;;  %vm787_vm2 = vcmask (!%p450_p2), 1041408  }
   0x6   : > { %453 = sbr.rel (%p450_p2) target bundleno = 1389 (0x56d), region = 80  ;;  %2242 = vmatprep.subr.msk.bf16.mxu1 (!%p450_p2), %vm619_vm0, %v553_v0  ;;  %2241 = vmatprep.subr.msk.bf16.mxu0 (!%p450_p2), %vm619_vm0, %v553_v0  ;;  %v621_v1 = vsel (!%p450_p2), %vm619_vm0, %v553_v0, 0  ;;  %p503_p3 = scmp.lt.s32.totalorder (!%p450_p2), %s1928_s22, 31  ;;  %v720_v2 = vld [vmem:[%s2638_s2] sm:$0x3] (!%p450_p2)  ;;  %v2289_v3 = vmov (!%p450_p2), 65535  }
   0x7   : > { %2240 = vmatpush3.bf16.msra.mxu1 (!%p450_p2), %v621_v1  ;;  %2098 = vmatpush3.bf16.msra.mxu0 (!%p450_p2), %v621_v1  ;;  %v788_v4 = vsel (!%p450_p2), %vm786_vm1, 4294967295, %v2289_v3  ;;  %vm594_vm3 = vcmask (!%p450_p2), 64512   ;;  %vm761_vm4 = vcmask (!%p450_p2), 23552   ;;  %v2269_v23 = vld [vmem:[%s2643_s7] sm:$0xff] (!%p450_p2)   ;;  %v2270_v24 = vld [vmem:[%s2643_s7 + $0x8] sm:$0xff] (!%p450_p2)   ;;  %v2271_v25 = vld [vmem:[%s2643_s7 + $0x10] sm:$0xff] (!%p450_p2)  }
   0x8   : > { %v2387_v5 = vsel (!%p450_p2), %vm787_vm2, %v788_v4, 0  ;;  %2133 = vmatprep.subr.bf16.mxu0 (!%p450_p2), %v2269_v23  ;;  %v2272_v26 = vld [vmem:[%s2643_s7 + $0x18] sm:$0xff] (!%p450_p2)   ;;  %s2290_s27 = smov (!%p450_p2), 64   ;;  %v2452_v44 = vld [vmem:[%s2641_s5] ss:$0 sm:$0xff] (!%p450_p2)  ;;  %v2274_v48 = vld [vmem:[%s2645_s9 + $0x8] sm:$0xff] (!%p450_p2)  }
   0x9   : > { %v791_v6 = vand.u32 (!%p450_p2), %v2387_v5, %v720_v2  ;;  %v2273_v47 = vld [vmem:[%s2645_s9] sm:$0xff] (!%p450_p2)   ;;  %vm976_vm5 = vcmask (!%p450_p2), 523264   ;;  %vm1145_vm6 = vcmask (!%p450_p2), 261120  }
   0xb   : > { %2115 = vmatprep.subr.bf16.mxu1 (!%p450_p2), %v791_v6 }
   0xd   : > { %s2653_s22 = smov (!%p503_p3, %s1928_s22), 31 }
   0xe   : > { %s1929_s25 = sshll.u32 %s2653_s22, 2  ;;  %s1933_s30 = sshll.u32 %s2653_s22, 3 }
   0xf   : > { %s512_s28 = scalar_lea.vmem %s2637_s1, %s1929_s25  ;;  %s506_s16 = scalar_lea.vmem %s2636_s0, %s1929_s25 }
  0x10   : > { %v2253_v7 = vld [vmem:[%s512_s28] sm:$0xff]   ;;  %v2255_v9 = vld [vmem:[%s512_s28 + $0x8] sm:$0xff]   ;;  %v2257_v11 = vld [vmem:[%s512_s28 + $0x10] sm:$0xff]   ;;  %s2599_s21 = scalar_lea.vmem %s2651_s15, %s1933_s30 }
  0x11   : > { %v2254_v8 = vld [vmem:[%s512_s28 + $0x20] sm:$0xff]   ;;  %2099 = vmatprep.mubr.msk.bf16.mxu0 %vm594_vm3, %v2253_v7  ;;  %v2256_v10 = vld [vmem:[%s512_s28 + $0x28] sm:$0xff]   ;;  %v2258_v12 = vld [vmem:[%s512_s28 + $0x30] sm:$0xff]  }
  0x12   : > { %2107 = vmatprep.mubr.msk.bf16.mxu1 %vm594_vm3, %v2254_v8  ;;  %2100 = vmatmul.mubr.msk.bf16.vlgmr.msra.gmra.mrb[0].mxu0 %vm594_vm3, %v2255_v9  ;;  %v2259_v13 = vld [vmem:[%s512_s28 + $0x18] sm:$0xff]   ;;  %v2261_v15 = vld [vmem:[%s506_s16] sm:$0xff]   ;;  %v2262_v16 = vld [vmem:[%s506_s16 + $0x8] sm:$0xff]  }
  0x13   : > { %2108 = vmatmul.mubr.msk.bf16.vlgmr.msra.gmra.mrb[0].mxu1 %vm594_vm3, %v2256_v10  ;;  %2103 = vmatprep.mubr.msk.bf16.mxu0 %vm594_vm3, %v2257_v11  ;;  %v2260_v14 = vld [vmem:[%s512_s28 + $0x38] sm:$0xff]   ;;  %v2263_v17 = vld [vmem:[%s506_s16 + $0x10] sm:$0xff]   ;;  %v2265_v19 = vld [vmem:[%s506_s16 + $0x20] sm:$0xff]  }
  0x14   : > { %2116 = vmatpush3.bf16.msra.mxu1 %v791_v6  ;;  %2111 = vmatprep.mubr.msk.bf16.mxu1 %vm594_vm3, %v2258_v12  ;;  %v2264_v18 = vld [vmem:[%s506_s16 + $0x18] sm:$0xff]   ;;  %v2266_v20 = vld [vmem:[%s506_s16 + $0x28] sm:$0xff]   ;;  %v2267_v21 = vld [vmem:[%s506_s16 + $0x30] sm:$0xff]  }
  0x15   : > { %v2268_v22 = vld [vmem:[%s506_s16 + $0x38] sm:$0xff]   ;;  %2134 = vmatpush3.bf16.msra.mxu0 %v2269_v23  ;;  %2157 = vmatprep.subr.bf16.mxu1 %v2273_v47 }
  0x16   : > { %2135 = vmatprep.subr.bf16.mxu0 %v2270_v24 }
  0x19   : > { %2136 = vmatpush3.bf16.msra.mxu0 %v2270_v24 }
  0x1a   : > { %2104 = vmatmul.mubr.msk.bf16.gmra.mrb[4].mxu0 %vm594_vm3, %v2259_v13  ;;  %2137 = vmatprep.subr.bf16.mxu0 %v2271_v25 }
  0x1b   : > { %2112 = vmatmul.mubr.msk.bf16.gmra.mrb[4].mxu1 %vm594_vm3, %v2260_v14 }
  0x1c   : > { %2117 = vmatprep.mubr.msk.bf16.mxu1 %vm761_vm4, %v2261_v15 }
  0x1d   : > { %2138 = vmatpush3.bf16.msra.mxu0 %v2271_v25 }
  0x1e   : > { %2139 = vmatprep.subr.bf16.mxu0 %v2272_v26 }
  0x21   : > { %2140 = vmatpush3.bf16.msra.mxu0 %v2272_v26 }
  0x23   : > { %2118 = vmatmul.mubr.msk.bf16.vlgmr.msra.gmra.mrb[8].mxu1 %vm761_vm4, %v2262_v16 }
  0x24   : > { %2121 = vmatprep.mubr.msk.bf16.mxu1 %vm761_vm4, %v2263_v17  ;;  %2158 = vmatpush3.bf16.msra.mxu1 %v2273_v47 }
  0x25   : > { %2159 = vmatprep.subr.bf16.mxu1 %v2274_v48 }
  0x28   : > { %2160 = vmatpush3.bf16.msra.mxu1 %v2274_v48 }
  0x2b   : > { %2122 = vmatmul.mubr.msk.bf16.gmra.mrb[12].mxu1 %vm761_vm4, %v2264_v18 }
  0x2c   : > { %2125 = vmatprep.mubr.msk.bf16.mxu1 %vm761_vm4, %v2265_v19 }
  0x33   : > { %2126 = vmatmul.mubr.msk.bf16.gmra.mrb[16].mxu1 %vm761_vm4, %v2266_v20 }
  0x34   : > { %2129 = vmatprep.mubr.msk.bf16.mxu1 %vm761_vm4, %v2267_v21 }
  0x3b   : > { %2130 = vmatmul.mubr.msk.bf16.gmra.mrb[20].mxu1 %vm761_vm4, %v2268_v22 }
  0xe5   : > { %v2101_v27 = vpop.f32.mrb[0].mxu0 }
  0xe6   : > { %v2425_v28 = vpop.f32.mrb[0].mxu1  ;;  %v657_v29 = vpop.f32.mrb[1].mxu0  ;;  %1296 = vrot.lane.b32.xlu1 %v2101_v27, %s2290_s27 }
  0xe7   : > { %v2428_v30 = vpop.f32.mrb[1].mxu1  ;;  %1292 = vrot.lane.b32.xlu0 %v657_v29, %s2290_s27  ;;  %v2102_v31 = vpop.f32.mrb[2].mxu0 }
  0xe8   : > { %v2431_v32 = vpop.f32.mrb[2].mxu1  ;;  %v660_v33 = vpop.f32.mrb[3].mxu0 }
  0xe9   : > { %v2433_v34 = vpop.f32.mrb[3].mxu1 }
  0xea   : > { %1298 = vrot.lane.b32.xlu1 %v2102_v31, %s2290_s27 }
  0xeb   : > { %1294 = vrot.lane.b32.xlu0 %v660_v33, %s2290_s27 }
  0xed   : > { %v2105_v35 = vpop.f32.mrb[4].mxu0 }
  0xee   : > { %v2437_v36 = vpop.f32.mrb[4].mxu1  ;;  %v673_v37 = vpop.f32.mrb[5].mxu0 }
  0xef   : > { %v2439_v38 = vpop.f32.mrb[5].mxu1  ;;  %1300 = vrot.lane.b32.xlu0 %v673_v37, %s2290_s27  ;;  %v2106_v39 = vpop.f32.mrb[6].mxu0 }
  0xf0   : > { %v2442_v40 = vpop.f32.mrb[6].mxu1  ;;  %v676_v41 = vpop.f32.mrb[7].mxu0 }
  0xf1   : > { %v2444_v42 = vpop.f32.mrb[7].mxu1  ;;  %1302 = vrot.lane.b32.xlu1 %v676_v41, %s2290_s27 }
  0xf3   : > { %1304 = vrot.lane.b32.xlu0 %v2105_v35, %s2290_s27 }
  0xf5   : > { %1306 = vrot.lane.b32.xlu1 %v2106_v39, %s2290_s27 }
  0xf6   : > { %v2119_v43 = vpop.f32.mrb[8].mxu1 }
  0xf7   : > { %v836_v45 = vadd.f32 %v2119_v43, %v2101_v27  ;;  %v827_v46 = vpop.f32.mrb[9].mxu1  ;;  %1308 = vrot.lane.b32.xlu0 %v2428_v30, %s2290_s27 }
  0xf8   : > { %v828_v49 = vadd.f32 %v827_v46, %v657_v29  ;;  %v2120_v50 = vpop.f32.mrb[10].mxu1 }
  0xf9   : > { %v899_v51 = vadd.f32 %v2452_v44, %v836_v45  ;;  %v839_v52 = vadd.f32 %v2120_v50, %v2102_v31  ;;  %v830_v53 = vpop.f32.mrb[11].mxu1  ;;  %1310 = vrot.lane.b32.xlu1 %v2433_v34, %s2290_s27 }
  0xfa   : > { %v897_v54 = vadd.f32 %v2452_v44, %v828_v49  ;;  %v831_v55 = vadd.f32 %v830_v53, %v660_v33 }
  0xfb   : > { %v900_v56 = vadd.f32 %v2452_v44, %v839_v52  ;;  %1312 = vrot.lane.b32.xlu0 %v2425_v28, %s2290_s27  ;;  %v915_v58 = vmax.f32 %v899_v51, 0.0 }
  0xfc   : > { %v898_v57 = vadd.f32 %v2452_v44, %v831_v55  ;;  %v913_v60 = vmax.f32 %v897_v54, 0.0 }
  0xfd   : > { %v916_v59 = vmax.f32 %v900_v56, 0.0  ;;  %1314 = vrot.lane.b32.xlu1 %v2431_v32, %s2290_s27 }
  0xfe   : > { %v914_v61 = vmax.f32 %v898_v57, 0.0  ;;  %v2123_v62 = vpop.f32.mrb[12].mxu1 }
  0xff   : > { %v930_v63 = vpack.c.bf16 %v916_v59, %v915_v58  ;;  %v852_v0 = vadd.f32 %v2123_v62, %v2105_v35  ;;  %v843_v1 = vpop.f32.mrb[13].mxu1  ;;  %1316 = vrot.lane.b32.xlu0 %v2439_v38, %s2290_s27 }
 0x100   : > { %v929_v2 = vpack.c.bf16 %v914_v61, %v913_v60  ;;  %v844_v3 = vadd.f32 %v843_v1, %v673_v37  ;;  %v2124_v4 = vpop.f32.mrb[14].mxu1 }
 0x101   : > { %v903_v6 = vadd.f32 %v2452_v44, %v852_v0  ;;  %v855_v7 = vadd.f32 %v2124_v4, %v2106_v39  ;;  %v846_v8 = vpop.f32.mrb[15].mxu1  ;;  %1318 = vrot.lane.b32.xlu1 %v2444_v42, %s2290_s27 }
 0x102   : > { %v901_v9 = vadd.f32 %v2452_v44, %v844_v3  ;;  %v847_v10 = vadd.f32 %v846_v8, %v676_v41  ;;  %2141 = vmatprep.mubr.msk.bf16.mxu0 %vm976_vm5, %v929_v2 }
 0x103   : > { %v904_v11 = vadd.f32 %v2452_v44, %v855_v7  ;;  %2142 = vmatmul.mubr.msk.bf16.vlgmr.msra.gmra.mrb[8].mxu0 %vm976_vm5, %v930_v63  ;;  %1320 = vrot.lane.b32.xlu0 %v2437_v36, %s2290_s27  ;;  %v919_v13 = vmax.f32 %v903_v6, 0.0 }
 0x104   : > { %v902_v12 = vadd.f32 %v2452_v44, %v847_v10  ;;  %v917_v15 = vmax.f32 %v901_v9, 0.0 }
 0x105   : > { %v920_v14 = vmax.f32 %v904_v11, 0.0  ;;  %1322 = vrot.lane.b32.xlu1 %v2442_v40, %s2290_s27 }
 0x106   : > { %v918_v16 = vmax.f32 %v902_v12, 0.0  ;;  %v2127_v17 = vpop.f32.mrb[16].mxu1 }
 0x107   : > { %v932_v18 = vpack.c.bf16 %v920_v14, %v919_v13  ;;  %v868_v19 = vadd.f32 %v2127_v17, %v2425_v28  ;;  %v859_v20 = vpop.f32.mrb[17].mxu1 }
 0x108   : > { %v931_v21 = vpack.c.bf16 %v918_v16, %v917_v15  ;;  %v860_v22 = vadd.f32 %v859_v20, %v2428_v30  ;;  %v2128_v23 = vpop.f32.mrb[18].mxu1 }
 0x109   : > { %v907_v24 = vadd.f32 %v2452_v44, %v868_v19  ;;  %v871_v25 = vadd.f32 %v2128_v23, %v2431_v32  ;;  %v862_v26 = vpop.f32.mrb[19].mxu1 }
 0x10a   : > { %v905_v27 = vadd.f32 %v2452_v44, %v860_v22  ;;  %v863_v29 = vadd.f32 %v862_v26, %v2433_v34  ;;  %2145 = vmatprep.mubr.msk.bf16.mxu0 %vm976_vm5, %v931_v21 }
 0x10b   : > { %v908_v31 = vadd.f32 %v2452_v44, %v871_v25  ;;  %2146 = vmatmul.mubr.msk.bf16.gmra.mrb[12].mxu0 %vm976_vm5, %v932_v18  ;;  %v923_v33 = vmax.f32 %v907_v24, 0.0 }
 0x10c   : > { %v906_v28 = vadd.f32 %v2452_v44, %v863_v29  ;;  %v921_v35 = vmax.f32 %v905_v27, 0.0 }
 0x10d   : > { %v924_v30 = vmax.f32 %v908_v31, 0.0 }
 0x10e   : > { %v922_v37 = vmax.f32 %v906_v28, 0.0  ;;  %v2131_v39 = vpop.f32.mrb[20].mxu1 }
 0x10f   : > { %v934_v41 = vpack.c.bf16 %v924_v30, %v923_v33  ;;  %v884_v32 = vadd.f32 %v2131_v39, %v2437_v36  ;;  %v875_v43 = vpop.f32.mrb[21].mxu1 }
 0x110   : > { %v933_v45 = vpack.c.bf16 %v922_v37, %v921_v35  ;;  %v876_v34 = vadd.f32 %v875_v43, %v2439_v38  ;;  %v2132_v46 = vpop.f32.mrb[22].mxu1 }
 0x111   : > { %v911_v47 = vadd.f32 %v2452_v44, %v884_v32  ;;  %v887_v48 = vadd.f32 %v2132_v46, %v2442_v40  ;;  %v878_v49 = vpop.f32.mrb[23].mxu1  ;;  %v1275_v40 = vld [vmem:[%s2639_s3] sm:$0x3] }
 0x112   : > { %v909_v50 = vadd.f32 %v2452_v44, %v876_v34  ;;  %v879_v51 = vadd.f32 %v878_v49, %v2444_v42  ;;  %2149 = vmatprep.mubr.msk.bf16.mxu0 %vm976_vm5, %v933_v45  ;;  %v1365_v42 = vand.u32 %v1275_v40, %v2387_v5 }
 0x113   : > { %v912_v52 = vadd.f32 %v2452_v44, %v887_v48  ;;  %2150 = vmatmul.mubr.msk.bf16.gmra.mrb[16].mxu0 %vm976_vm5, %v934_v41  ;;  %v927_v53 = vmax.f32 %v911_v47, 0.0 }
 0x114   : > { %v910_v36 = vadd.f32 %v2452_v44, %v879_v51  ;;  %v925_v54 = vmax.f32 %v909_v50, 0.0  ;;  %2177 = vmatprep.subr.bf16.mxu0 %v1365_v42  ;;  %v1967_v44 = vld [vmem:[%s2644_s8] ss:$0 sm:$0xff] }
 0x115   : > { %v928_v38 = vmax.f32 %v912_v52, 0.0  ;;  %2178 = vmatpush3.bf16.msra.mxu0 %v1365_v42 }
 0x116   : > { %v926_v55 = vmax.f32 %v910_v36, 0.0 }
 0x117   : > { %v936_v56 = vpack.c.bf16 %v928_v38, %v927_v53  ;;  %v2275_v38 = vld [vmem:[%s2647_s11] sm:$0xff]  }
 0x118   : > { %v935_v57 = vpack.c.bf16 %v926_v55, %v925_v54  ;;  %v2276_v54 = vld [vmem:[%s2647_s11 + $0x8] sm:$0xff]   ;;  %2195 = vmatprep.subr.bf16.mxu1 %v2275_v38  ;;  %v2277_v55 = vld [vmem:[%s2647_s11 + $0x10] sm:$0xff]  }
 0x11a   : > { %2153 = vmatprep.mubr.msk.bf16.mxu0 %vm976_vm5, %v935_v57  ;;  %v1980_v57 = vld [vmem:[%s2646_s10] ss:$0 sm:$0xff] }
 0x11b   : > { %2154 = vmatmul.mubr.msk.bf16.gmra.mrb[20].mxu0 %vm976_vm5, %v936_v56 }
 0x1d6   : > { %v2143_v58 = vpop.f32.mrb[8].mxu0 }
 0x1d7   : > { %v1044_v59 = vadd.f32 %v2143_v58, %v1967_v44  ;;  %v1035_v60 = vpop.f32.mrb[9].mxu0 }
 0x1d8   : > { %v1036_v61 = vadd.f32 %v1967_v44, %v1035_v60  ;;  %v2144_v62 = vpop.f32.mrb[10].mxu0 }
 0x1d9   : > { %v1047_v63 = vadd.f32 %v2144_v62, %v1967_v44  ;;  %v1038_v0 = vpop.f32.mrb[11].mxu0  ;;  %v1100_v2 = vmax.f32 %v1044_v59, 0.0 }
 0x1da   : > { %v1039_v1 = vadd.f32 %v1967_v44, %v1038_v0  ;;  %v1098_v4 = vmax.f32 %v1036_v61, 0.0 }
 0x1db   : > { %v1101_v3 = vmax.f32 %v1047_v63, 0.0 }
 0x1dc   : > { %v1099_v6 = vmax.f32 %v1039_v1, 0.0 }
 0x1dd   : > { %v1115_v7 = vpack.c.bf16 %v1101_v3, %v1100_v2 }
 0x1de   : > { %v1114_v5 = vpack.c.bf16 %v1099_v6, %v1098_v4  ;;  %v2147_v8 = vpop.f32.mrb[12].mxu0 }
 0x1df   : > { %v1060_v9 = vadd.f32 %v2147_v8, %v1967_v44  ;;  %v1051_v10 = vpop.f32.mrb[13].mxu0 }
 0x1e0   : > { %v1052_v11 = vadd.f32 %v1967_v44, %v1051_v10  ;;  %v2148_v12 = vpop.f32.mrb[14].mxu0  ;;  %2161 = vmatprep.mubr.msk.bf16.mxu1 %vm1145_vm6, %v1114_v5 }
 0x1e1   : > { %v1063_v13 = vadd.f32 %v2148_v12, %v1967_v44  ;;  %v1054_v14 = vpop.f32.mrb[15].mxu0  ;;  %2162 = vmatmul.mubr.msk.bf16.vlgmr.msra.gmra.mrb[24].mxu1 %vm1145_vm6, %v1115_v7  ;;  %v1104_v16 = vmax.f32 %v1060_v9, 0.0 }
 0x1e2   : > { %v1055_v15 = vadd.f32 %v1967_v44, %v1054_v14  ;;  %v1102_v18 = vmax.f32 %v1052_v11, 0.0  ;;  %2196 = vmatpush3.bf16.msra.mxu1 %v2275_v38 }
 0x1e3   : > { %v1105_v17 = vmax.f32 %v1063_v13, 0.0  ;;  %2197 = vmatprep.subr.bf16.mxu1 %v2276_v54 }
 0x1e4   : > { %v1103_v19 = vmax.f32 %v1055_v15, 0.0 }
 0x1e5   : > { %v1117_v20 = vpack.c.bf16 %v1105_v17, %v1104_v16 }
 0x1e6   : > { %v1116_v21 = vpack.c.bf16 %v1103_v19, %v1102_v18  ;;  %v2151_v22 = vpop.f32.mrb[16].mxu0  ;;  %2198 = vmatpush3.bf16.msra.mxu1 %v2276_v54 }
 0x1e7   : > { %v1076_v23 = vadd.f32 %v2151_v22, %v1967_v44  ;;  %v1067_v24 = vpop.f32.mrb[17].mxu0  ;;  %2199 = vmatprep.subr.bf16.mxu1 %v2277_v55 }
 0x1e8   : > { %v1068_v25 = vadd.f32 %v1967_v44, %v1067_v24  ;;  %v2152_v26 = vpop.f32.mrb[18].mxu0  ;;  %2165 = vmatprep.mubr.msk.bf16.mxu1 %vm1145_vm6, %v1116_v21 }
 0x1e9   : > { %v1079_v27 = vadd.f32 %v2152_v26, %v1967_v44  ;;  %v1070_v29 = vpop.f32.mrb[19].mxu0  ;;  %2166 = vmatmul.mubr.msk.bf16.gmra.mrb[28].mxu1 %vm1145_vm6, %v1117_v20  ;;  %v1108_v28 = vmax.f32 %v1076_v23, 0.0 }
 0x1ea   : > { %v1071_v31 = vadd.f32 %v1967_v44, %v1070_v29  ;;  %v1106_v30 = vmax.f32 %v1068_v25, 0.0  ;;  %2200 = vmatpush3.bf16.msra.mxu1 %v2277_v55 }
 0x1eb   : > { %v1109_v33 = vmax.f32 %v1079_v27, 0.0 }
 0x1ec   : > { %v1107_v35 = vmax.f32 %v1071_v31, 0.0 }
 0x1ed   : > { %v1119_v37 = vpack.c.bf16 %v1109_v33, %v1108_v28  ;;  %v2278_v28 = vld [vmem:[%s2647_s11 + $0x18] sm:$0xff]   ;;  %v2279_v33 = vld [vmem:[%s2649_s13] sm:$0xff]  }
 0x1ee   : > { %v1118_v39 = vpack.c.bf16 %v1107_v35, %v1106_v30  ;;  %v2155_v41 = vpop.f32.mrb[20].mxu0  ;;  %2201 = vmatprep.subr.bf16.mxu1 %v2278_v28  ;;  %v2280_v30 = vld [vmem:[%s2649_s13 + $0x8] sm:$0xff]   ;;  %2219 = vmatprep.subr.bf16.mxu0 %v2279_v33  ;;  %v1293_v35 = vpop.permute.xlu0 %1292 }
 0x1ef   : > { %v1092_v32 = vadd.f32 %v2155_v41, %v1967_v44  ;;  %v1083_v43 = vpop.f32.mrb[21].mxu0  ;;  %2202 = vmatpush3.bf16.msra.mxu1 %v2278_v28 }
 0x1f0   : > { %v1084_v45 = vadd.f32 %v1967_v44, %v1083_v43  ;;  %v2156_v34 = vpop.f32.mrb[22].mxu0  ;;  %2169 = vmatprep.mubr.msk.bf16.mxu1 %vm1145_vm6, %v1118_v39 }
 0x1f1   : > { %v1095_v46 = vadd.f32 %v2156_v34, %v1967_v44  ;;  %v1086_v47 = vpop.f32.mrb[23].mxu0  ;;  %2170 = vmatmul.mubr.msk.bf16.gmra.mrb[32].mxu1 %vm1145_vm6, %v1119_v37  ;;  %v1112_v49 = vmax.f32 %v1092_v32, 0.0  ;;  %v1297_v37 = vpop.permute.xlu1 %1296 }
 0x1f2   : > { %v1087_v48 = vadd.f32 %v1967_v44, %v1086_v47  ;;  %v1110_v51 = vmax.f32 %v1084_v45, 0.0  ;;  %v1295_v39 = vpop.permute.xlu0 %1294 }
 0x1f3   : > { %v1113_v50 = vmax.f32 %v1095_v46, 0.0  ;;  %v2555_v46 = vld [vmem:[%s2642_s6] ss:$0 sm:$0xff] }
 0x1f4   : > { %v1111_v52 = vmax.f32 %v1087_v48, 0.0 }
 0x1f5   : > { %v1121_v36 = vpack.c.bf16 %v1113_v50, %v1112_v49  ;;  %v1299_v41 = vpop.permute.xlu1 %1298 }
 0x1f6   : > { %v1120_v53 = vpack.c.bf16 %v1111_v52, %v1110_v51  ;;  %v1301_v32 = vpop.permute.xlu0 %1300 }
 0x1f8   : > { %2173 = vmatprep.mubr.msk.bf16.mxu1 %vm1145_vm6, %v1120_v53 }
 0x1f9   : > { %2174 = vmatmul.mubr.msk.bf16.gmra.mrb[36].mxu1 %vm1145_vm6, %v1121_v36  ;;  %v1303_v43 = vpop.permute.xlu1 %1302 }
 0x1fa   : > { %v1305_v45 = vpop.permute.xlu0 %1304 }
 0x1fd   : > { %v1307_v49 = vpop.permute.xlu1 %1306 }
 0x2b4   : > { %v2163_v56 = vpop.f32.mrb[24].mxu1 }
 0x2b5   : > { %v1204_v40 = vpop.f32.mrb[25].mxu1  ;;  %v1213_v44 = vadd.f32 %v2163_v56, %v1980_v57  ;;  %v1309_v56 = vpop.permute.xlu0 %1308 }
 0x2b6   : > { %v2164_v42 = vpop.f32.mrb[26].mxu1  ;;  %v1205_v60 = vadd.f32 %v1980_v57, %v1204_v40 }
 0x2b7   : > { %v1216_v58 = vadd.f32 %v2164_v42, %v1980_v57  ;;  %v1207_v59 = vpop.f32.mrb[27].mxu1 }
 0x2b8   : > { %v1208_v61 = vadd.f32 %v1980_v57, %v1207_v59 }
 0x2b9   : > { %v1268_v62 = vpack.c.bf16 %v1216_v58, %v1213_v44  ;;  %v1311_v44 = vpop.permute.xlu1 %1310 }
 0x2ba   : > { %v1267_v63 = vpack.c.bf16 %v1208_v61, %v1205_v60 }
 0x2bc   : > { %v2167_v0 = vpop.f32.mrb[28].mxu1  ;;  %2179 = vmatprep.mubr.msk.bf16.mxu0 %vm761_vm4, %v1267_v63 }
 0x2bd   : > { %v1220_v1 = vpop.f32.mrb[29].mxu1  ;;  %2180 = vmatmul.mubr.msk.bf16.vlgmr.msra.gmra.mrb[24].mxu0 %vm761_vm4, %v1268_v62  ;;  %v1229_v3 = vadd.f32 %v2167_v0, %v1980_v57 }
 0x2be   : > { %v2168_v2 = vpop.f32.mrb[30].mxu1  ;;  %v1221_v7 = vadd.f32 %v1980_v57, %v1220_v1  ;;  %2220 = vmatpush3.bf16.msra.mxu0 %v2279_v33 }
 0x2bf   : > { %v1232_v4 = vadd.f32 %v2168_v2, %v1980_v57  ;;  %v1223_v6 = vpop.f32.mrb[31].mxu1  ;;  %2221 = vmatprep.subr.bf16.mxu0 %v2280_v30 }
 0x2c0   : > { %v1224_v5 = vadd.f32 %v1980_v57, %v1223_v6 }
 0x2c1   : > { %v1270_v8 = vpack.c.bf16 %v1232_v4, %v1229_v3 }
 0x2c2   : > { %v1269_v9 = vpack.c.bf16 %v1224_v5, %v1221_v7  ;;  %2222 = vmatpush3.bf16.msra.mxu0 %v2280_v30  ;;  %v1313_v7 = vpop.permute.xlu0 %1312 }
 0x2c4   : > { %v2171_v10 = vpop.f32.mrb[32].mxu1  ;;  %2183 = vmatprep.mubr.msk.bf16.mxu0 %vm761_vm4, %v1269_v9 }
 0x2c5   : > { %v1236_v11 = vpop.f32.mrb[33].mxu1  ;;  %2184 = vmatmul.mubr.msk.bf16.gmra.mrb[28].mxu0 %vm761_vm4, %v1270_v8  ;;  %v1245_v13 = vadd.f32 %v2171_v10, %v1980_v57  ;;  %v1315_v10 = vpop.permute.xlu1 %1314 }
 0x2c6   : > { %v2172_v12 = vpop.f32.mrb[34].mxu1  ;;  %v1237_v16 = vadd.f32 %v1980_v57, %v1236_v11 }
 0x2c7   : > { %v1248_v14 = vadd.f32 %v2172_v12, %v1980_v57  ;;  %v1239_v15 = vpop.f32.mrb[35].mxu1 }
 0x2c8   : > { %v1240_v17 = vadd.f32 %v1980_v57, %v1239_v15 }
 0x2c9   : > { %v1272_v18 = vpack.c.bf16 %v1248_v14, %v1245_v13 }
 0x2ca   : > { %v1271_v19 = vpack.c.bf16 %v1240_v17, %v1237_v16 }
 0x2cc   : > { %v2175_v20 = vpop.f32.mrb[36].mxu1  ;;  %2187 = vmatprep.mubr.msk.bf16.mxu0 %vm761_vm4, %v1271_v19 }
 0x2cd   : > { %v1252_v21 = vpop.f32.mrb[37].mxu1  ;;  %2188 = vmatmul.mubr.msk.bf16.gmra.mrb[32].mxu0 %vm761_vm4, %v1272_v18  ;;  %v1261_v23 = vadd.f32 %v2175_v20, %v1980_v57  ;;  %v1317_v20 = vpop.permute.xlu0 %1316 }
 0x2ce   : > { %v2176_v22 = vpop.f32.mrb[38].mxu1  ;;  %v1253_v26 = vadd.f32 %v1980_v57, %v1252_v21 }
 0x2cf   : > { %v1264_v24 = vadd.f32 %v2176_v22, %v1980_v57  ;;  %v1255_v25 = vpop.f32.mrb[39].mxu1 }
 0x2d0   : > { %v1256_v27 = vadd.f32 %v1980_v57, %v1255_v25 }
 0x2d1   : > { %v1274_v29 = vpack.c.bf16 %v1264_v24, %v1261_v23 }
 0x2d2   : > { %v1273_v31 = vpack.c.bf16 %v1256_v27, %v1253_v26  ;;  %v1319_v27 = vpop.permute.xlu1 %1318 }
 0x2d4   : > { %2191 = vmatprep.mubr.msk.bf16.mxu0 %vm761_vm4, %v1273_v31 }
 0x2d5   : > { %2192 = vmatmul.mubr.msk.bf16.gmra.mrb[36].mxu0 %vm761_vm4, %v1274_v29 }
 0x390   : > { %v2181_v34 = vpop.f32.mrb[24].mxu0 }
 0x391   : > { %v1410_v47 = vadd.f32 %v2181_v34, %v1297_v37  ;;  %v1401_v48 = vpop.f32.mrb[25].mxu0  ;;  %v1321_v37 = vpop.permute.xlu0 %1320 }
 0x392   : > { %v1402_v50 = vadd.f32 %v1401_v48, %v1293_v35  ;;  %v2182_v51 = vpop.f32.mrb[26].mxu0 }
 0x393   : > { %v1473_v52 = vadd.f32 %v2555_v46, %v1410_v47  ;;  %v1413_v36 = vadd.f32 %v2182_v51, %v1299_v41  ;;  %v1404_v53 = vpop.f32.mrb[27].mxu0  ;;  %v1323_v47 = vpop.permute.xlu1 %1322 }
 0x394   : > { %v1471_v38 = vadd.f32 %v2555_v46, %v1402_v50  ;;  %v1405_v54 = vadd.f32 %v1404_v53, %v1295_v39 }
 0x395   : > { %v1474_v55 = vadd.f32 %v2555_v46, %v1413_v36  ;;  %v1489_v40 = vmax.f32 %v1473_v52, 0.0 }
 0x396   : > { %v1472_v57 = vadd.f32 %v2555_v46, %v1405_v54  ;;  %v1487_v58 = vmax.f32 %v1471_v38, 0.0 }
 0x397   : > { %v1490_v42 = vmax.f32 %v1474_v55, 0.0 }
 0x398   : > { %v1488_v59 = vmax.f32 %v1472_v57, 0.0  ;;  %v2185_v60 = vpop.f32.mrb[28].mxu0 }
 0x399   : > { %v1504_v61 = vpack.c.bf16 %v1490_v42, %v1489_v40  ;;  %v1426_v62 = vadd.f32 %v2185_v60, %v1305_v45  ;;  %v1417_v63 = vpop.f32.mrb[29].mxu0 }
 0x39a   : > { %v1503_v0 = vpack.c.bf16 %v1488_v59, %v1487_v58  ;;  %v1418_v1 = vadd.f32 %v1417_v63, %v1301_v32  ;;  %v2186_v2 = vpop.f32.mrb[30].mxu0  ;;  %v2000_v59 = vld [vmem:[%s2648_s12] ss:$0 sm:$0xff] }
 0x39b   : > { %v1477_v3 = vadd.f32 %v2555_v46, %v1426_v62  ;;  %v1429_v4 = vadd.f32 %v2186_v2, %v1307_v49  ;;  %v1420_v6 = vpop.f32.mrb[31].mxu0 }
 0x39c   : > { %v1475_v5 = vadd.f32 %v2555_v46, %v1418_v1  ;;  %v1421_v8 = vadd.f32 %v1420_v6, %v1303_v43  ;;  %2203 = vmatprep.mubr.msk.bf16.mxu1 %vm976_vm5, %v1503_v0 }
 0x39d   : > { %v1478_v9 = vadd.f32 %v2555_v46, %v1429_v4  ;;  %2204 = vmatmul.mubr.msk.bf16.vlgmr.msra.gmra.mrb[40].mxu1 %vm976_vm5, %v1504_v61  ;;  %v1493_v12 = vmax.f32 %v1477_v3, 0.0 }
 0x39e   : > { %v1476_v11 = vadd.f32 %v2555_v46, %v1421_v8  ;;  %v1491_v14 = vmax.f32 %v1475_v5, 0.0 }
 0x39f   : > { %v1494_v13 = vmax.f32 %v1478_v9, 0.0 }
 0x3a0   : > { %v1492_v15 = vmax.f32 %v1476_v11, 0.0  ;;  %v2189_v16 = vpop.f32.mrb[32].mxu0 }
 0x3a1   : > { %v1506_v17 = vpack.c.bf16 %v1494_v13, %v1493_v12  ;;  %v1442_v18 = vadd.f32 %v2189_v16, %v1313_v7  ;;  %v1433_v19 = vpop.f32.mrb[33].mxu0 }
 0x3a2   : > { %v1505_v21 = vpack.c.bf16 %v1492_v15, %v1491_v14  ;;  %v1434_v22 = vadd.f32 %v1433_v19, %v1309_v56  ;;  %v2190_v23 = vpop.f32.mrb[34].mxu0 }
 0x3a3   : > { %v1481_v24 = vadd.f32 %v2555_v46, %v1442_v18  ;;  %v1445_v25 = vadd.f32 %v2190_v23, %v1315_v10  ;;  %v1436_v26 = vpop.f32.mrb[35].mxu0 }
 0x3a4   : > { %v1479_v29 = vadd.f32 %v2555_v46, %v1434_v22  ;;  %v1437_v31 = vadd.f32 %v1436_v26, %v1311_v44  ;;  %2207 = vmatprep.mubr.msk.bf16.mxu1 %vm976_vm5, %v1505_v21 }
 0x3a5   : > { %v1482_v28 = vadd.f32 %v2555_v46, %v1445_v25  ;;  %2208 = vmatmul.mubr.msk.bf16.gmra.mrb[44].mxu1 %vm976_vm5, %v1506_v17  ;;  %v1497_v30 = vmax.f32 %v1481_v24, 0.0 }
 0x3a6   : > { %v1480_v33 = vadd.f32 %v2555_v46, %v1437_v31  ;;  %v1495_v39 = vmax.f32 %v1479_v29, 0.0 }
 0x3a7   : > { %v1498_v35 = vmax.f32 %v1482_v28, 0.0 }
 0x3a8   : > { %v1496_v41 = vmax.f32 %v1480_v33, 0.0  ;;  %v2193_v32 = vpop.f32.mrb[36].mxu0 }
 0x3a9   : > { %v1508_v43 = vpack.c.bf16 %v1498_v35, %v1497_v30  ;;  %v1458_v45 = vadd.f32 %v2193_v32, %v1321_v37  ;;  %v1449_v34 = vpop.f32.mrb[37].mxu0 }
 0x3aa   : > { %v1507_v48 = vpack.c.bf16 %v1496_v41, %v1495_v39  ;;  %v1450_v49 = vadd.f32 %v1449_v34, %v1317_v20  ;;  %v2194_v50 = vpop.f32.mrb[38].mxu0 }
 0x3ab   : > { %v1485_v51 = vadd.f32 %v2555_v46, %v1458_v45  ;;  %v1461_v52 = vadd.f32 %v2194_v50, %v1323_v47  ;;  %v1452_v36 = vpop.f32.mrb[39].mxu0 }
 0x3ac   : > { %v1483_v53 = vadd.f32 %v2555_v46, %v1450_v49  ;;  %v1453_v38 = vadd.f32 %v1452_v36, %v1319_v27  ;;  %2211 = vmatprep.mubr.msk.bf16.mxu1 %vm976_vm5, %v1507_v48 }
 0x3ad   : > { %v1486_v54 = vadd.f32 %v2555_v46, %v1461_v52  ;;  %2212 = vmatmul.mubr.msk.bf16.gmra.mrb[48].mxu1 %vm976_vm5, %v1508_v43  ;;  %v1501_v56 = vmax.f32 %v1485_v51, 0.0 }
 0x3ae   : > { %v1484_v55 = vadd.f32 %v2555_v46, %v1453_v38  ;;  %v1499_v40 = vmax.f32 %v1483_v53, 0.0 }
 0x3af   : > { %v1502_v57 = vmax.f32 %v1486_v54, 0.0 }
 0x3b0   : > { %v1500_v42 = vmax.f32 %v1484_v55, 0.0  ;;  %v2013_v55 = vld [vmem:[%s2650_s14] ss:$0 sm:$0xff] }
 0x3b1   : > { %v1510_v44 = vpack.c.bf16 %v1502_v57, %v1501_v56 }
 0x3b2   : > { %v1509_v58 = vpack.c.bf16 %v1500_v42, %v1499_v40 }
 0x3b4   : > { %2215 = vmatprep.mubr.msk.bf16.mxu1 %vm976_vm5, %v1509_v58 }
 0x3b5   : > { %2216 = vmatmul.mubr.msk.bf16.gmra.mrb[52].mxu1 %vm976_vm5, %v1510_v44 }
 0x470   : > { %v2205_v60 = vpop.f32.mrb[40].mxu1 }
 0x471   : > { %v1617_v61 = vadd.f32 %v2205_v60, %v2000_v59  ;;  %v1608_v62 = vpop.f32.mrb[41].mxu1 }
 0x472   : > { %v1609_v63 = vadd.f32 %v2000_v59, %v1608_v62  ;;  %v2206_v0 = vpop.f32.mrb[42].mxu1 }
 0x473   : > { %v1620_v46 = vadd.f32 %v2206_v0, %v2000_v59  ;;  %v1611_v1 = vpop.f32.mrb[43].mxu1  ;;  %v1673_v3 = vmax.f32 %v1617_v61, 0.0 }
 0x474   : > { %v1612_v2 = vadd.f32 %v2000_v59, %v1611_v1  ;;  %v1671_v6 = vmax.f32 %v1609_v63, 0.0 }
 0x475   : > { %v1674_v4 = vmax.f32 %v1620_v46, 0.0 }
 0x476   : > { %v1672_v7 = vmax.f32 %v1612_v2, 0.0 }
 0x477   : > { %v1688_v5 = vpack.c.bf16 %v1674_v4, %v1673_v3 }
 0x478   : > { %v1687_v8 = vpack.c.bf16 %v1672_v7, %v1671_v6  ;;  %v2209_v9 = vpop.f32.mrb[44].mxu1 }
 0x479   : > { %v1633_v10 = vadd.f32 %v2209_v9, %v2000_v59  ;;  %v1624_v11 = vpop.f32.mrb[45].mxu1 }
 0x47a   : > { %v1625_v12 = vadd.f32 %v2000_v59, %v1624_v11  ;;  %v2210_v13 = vpop.f32.mrb[46].mxu1  ;;  %2223 = vmatprep.mubr.msk.bf16.mxu0 %vm1145_vm6, %v1687_v8 }
 0x47b   : > { %v1636_v14 = vadd.f32 %v2210_v13, %v2000_v59  ;;  %v1627_v15 = vpop.f32.mrb[47].mxu1  ;;  %2224 = vmatmul.mubr.msk.bf16.vlgmr.msra.gmra.mrb[40].mxu0 %vm1145_vm6, %v1688_v5  ;;  %v1677_v17 = vmax.f32 %v1633_v10, 0.0 }
 0x47c   : > { %v1628_v16 = vadd.f32 %v2000_v59, %v1627_v15  ;;  %v1675_v19 = vmax.f32 %v1625_v12, 0.0 }
 0x47d   : > { %v1678_v18 = vmax.f32 %v1636_v14, 0.0 }
 0x47e   : > { %v1676_v20 = vmax.f32 %v1628_v16, 0.0 }
 0x47f   : > { %v1690_v21 = vpack.c.bf16 %v1678_v18, %v1677_v17 }
 0x480   : > { %v1689_v22 = vpack.c.bf16 %v1676_v20, %v1675_v19  ;;  %v2213_v23 = vpop.f32.mrb[48].mxu1 }
 0x481   : > { %v1649_v24 = vadd.f32 %v2213_v23, %v2000_v59  ;;  %v1640_v25 = vpop.f32.mrb[49].mxu1 }
 0x482   : > { %v1641_v26 = vadd.f32 %v2000_v59, %v1640_v25  ;;  %v2214_v27 = vpop.f32.mrb[50].mxu1  ;;  %2227 = vmatprep.mubr.msk.bf16.mxu0 %vm1145_vm6, %v1689_v22 }
 0x483   : > { %v1652_v29 = vadd.f32 %v2214_v27, %v2000_v59  ;;  %v1643_v31 = vpop.f32.mrb[51].mxu1  ;;  %2228 = vmatmul.mubr.msk.bf16.gmra.mrb[44].mxu0 %vm1145_vm6, %v1690_v21  ;;  %v1681_v33 = vmax.f32 %v1649_v24, 0.0 }
 0x484   : > { %v1644_v28 = vadd.f32 %v2000_v59, %v1643_v31  ;;  %v1679_v35 = vmax.f32 %v1641_v26, 0.0 }
 0x485   : > { %v1682_v30 = vmax.f32 %v1652_v29, 0.0 }
 0x486   : > { %v1680_v37 = vmax.f32 %v1644_v28, 0.0 }
 0x487   : > { %v1692_v39 = vpack.c.bf16 %v1682_v30, %v1681_v33 }
 0x488   : > { %v1691_v41 = vpack.c.bf16 %v1680_v37, %v1679_v35  ;;  %v2217_v32 = vpop.f32.mrb[52].mxu1 }
 0x489   : > { %v1665_v43 = vadd.f32 %v2217_v32, %v2000_v59  ;;  %v1656_v45 = vpop.f32.mrb[53].mxu1 }
 0x48a   : > { %v1657_v34 = vadd.f32 %v2000_v59, %v1656_v45  ;;  %v2218_v47 = vpop.f32.mrb[54].mxu1  ;;  %2231 = vmatprep.mubr.msk.bf16.mxu0 %vm1145_vm6, %v1691_v41 }
 0x48b   : > { %v1668_v48 = vadd.f32 %v2218_v47, %v2000_v59  ;;  %v1659_v49 = vpop.f32.mrb[55].mxu1  ;;  %2232 = vmatmul.mubr.msk.bf16.gmra.mrb[48].mxu0 %vm1145_vm6, %v1692_v39  ;;  %v1685_v51 = vmax.f32 %v1665_v43, 0.0 }
 0x48c   : > { %v1660_v50 = vadd.f32 %v2000_v59, %v1659_v49  ;;  %v1683_v36 = vmax.f32 %v1657_v34, 0.0 }
 0x48d   : > { %v1686_v52 = vmax.f32 %v1668_v48, 0.0 }
 0x48e   : > { %v1684_v53 = vmax.f32 %v1660_v50, 0.0 }
 0x48f   : > { %v1694_v38 = vpack.c.bf16 %v1686_v52, %v1685_v51 }
 0x490   : > { %v1693_v54 = vpack.c.bf16 %v1684_v53, %v1683_v36 }
 0x492   : > { %2235 = vmatprep.mubr.msk.bf16.mxu0 %vm1145_vm6, %v1693_v54 }
 0x493   : > { %2236 = vmatmul.mubr.msk.bf16.gmra.mrb[52].mxu0 %vm1145_vm6, %v1694_v38 }
 0x54e   : > { %v2225_v56 = vpop.f32.mrb[40].mxu0 }
 0x54f   : > { %v1785_v57 = vadd.f32 %v2225_v56, %v2013_v55  ;;  %v1776_v40 = vpop.f32.mrb[41].mxu0 }
 0x550   : > { %v1777_v42 = vadd.f32 %v2013_v55, %v1776_v40  ;;  %v2226_v44 = vpop.f32.mrb[42].mxu0 }
 0x551   : > { %1841 = vst.msk [vmem:[%s2599_s21 + $0x10] sm:$0xff] %vm761_vm4, %v1785_v57  ;;  %v1788_v58 = vadd.f32 %v2226_v44, %v2013_v55  ;;  %v1779_v59 = vpop.f32.mrb[43].mxu0 }
 0x552   : > { %1839 = vst.msk [vmem:[%s2599_s21] sm:$0xff] %vm761_vm4, %v1777_v42  ;;  %v1780_v60 = vadd.f32 %v2013_v55, %v1779_v59 }
 0x553   : > { %1842 = vst.msk [vmem:[%s2599_s21 + $0x18] sm:$0xff] %vm761_vm4, %v1788_v58 }
 0x554   : > { %1840 = vst.msk [vmem:[%s2599_s21 + $0x8] sm:$0xff] %vm761_vm4, %v1780_v60 }
 0x556   : > { %v2229_v61 = vpop.f32.mrb[44].mxu0 }
 0x557   : > { %v1801_v62 = vadd.f32 %v2229_v61, %v2013_v55  ;;  %v1792_v63 = vpop.f32.mrb[45].mxu0 }
 0x558   : > { %v1793_v0 = vadd.f32 %v2013_v55, %v1792_v63  ;;  %v2230_v46 = vpop.f32.mrb[46].mxu0 }
 0x559   : > { %1845 = vst.msk [vmem:[%s2599_s21 + $0x30] sm:$0xff] %vm761_vm4, %v1801_v62  ;;  %v1804_v1 = vadd.f32 %v2230_v46, %v2013_v55  ;;  %v1795_v2 = vpop.f32.mrb[47].mxu0 }
 0x55a   : > { %1843 = vst.msk [vmem:[%s2599_s21 + $0x20] sm:$0xff] %vm761_vm4, %v1793_v0  ;;  %v1796_v3 = vadd.f32 %v2013_v55, %v1795_v2 }
 0x55b   : > { %1846 = vst.msk [vmem:[%s2599_s21 + $0x38] sm:$0xff] %vm761_vm4, %v1804_v1 }
 0x55c   : > { %1844 = vst.msk [vmem:[%s2599_s21 + $0x28] sm:$0xff] %vm761_vm4, %v1796_v3 }
 0x55e   : > { %v2233_v4 = vpop.f32.mrb[48].mxu0 }
 0x55f   : > { %v1817_v6 = vadd.f32 %v2233_v4, %v2013_v55  ;;  %v1808_v7 = vpop.f32.mrb[49].mxu0 }
 0x560   : > { %v1809_v5 = vadd.f32 %v2013_v55, %v1808_v7  ;;  %v2234_v8 = vpop.f32.mrb[50].mxu0 }
 0x561   : > { %1849 = vst.msk [vmem:[%s2599_s21 + $0x50] sm:$0xff] %vm761_vm4, %v1817_v6  ;;  %v1820_v9 = vadd.f32 %v2234_v8, %v2013_v55  ;;  %v1811_v10 = vpop.f32.mrb[51].mxu0 }
 0x562   : > { %1847 = vst.msk [vmem:[%s2599_s21 + $0x40] sm:$0xff] %vm761_vm4, %v1809_v5  ;;  %v1812_v11 = vadd.f32 %v2013_v55, %v1811_v10 }
 0x563   : > { %1850 = vst.msk [vmem:[%s2599_s21 + $0x58] sm:$0xff] %vm761_vm4, %v1820_v9 }
 0x564   : > { %1848 = vst.msk [vmem:[%s2599_s21 + $0x48] sm:$0xff] %vm761_vm4, %v1812_v11 }
 0x566   : > { %v2237_v12 = vpop.f32.mrb[52].mxu0 }
 0x567   : > { %v1833_v13 = vadd.f32 %v2237_v12, %v2013_v55  ;;  %v1824_v14 = vpop.f32.mrb[53].mxu0 }
 0x568   : > { %v1825_v15 = vadd.f32 %v2013_v55, %v1824_v14  ;;  %v2238_v16 = vpop.f32.mrb[54].mxu0 }
 0x569   : > { %1853 = vst.msk [vmem:[%s2599_s21 + $0x70] sm:$0xff] %vm761_vm4, %v1833_v13  ;;  %v1836_v17 = vadd.f32 %v2238_v16, %v2013_v55  ;;  %v1827_v18 = vpop.f32.mrb[55].mxu0 }
 0x56a   : > { %1851 = vst.msk [vmem:[%s2599_s21 + $0x60] sm:$0xff] %vm761_vm4, %v1825_v15  ;;  %v1828_v19 = vadd.f32 %v2013_v55, %v1827_v18 }
 0x56b   : > { %1854 = vst.msk [vmem:[%s2599_s21 + $0x78] sm:$0xff] %vm761_vm4, %v1836_v17 }
 0x56c   : > { %1852 = vst.msk [vmem:[%s2599_s21 + $0x68] sm:$0xff] %vm761_vm4, %v1828_v19 }
 0x56d PF: > { %s25_s18 = sadd.s32 1, %s2287_s18  }
 0x56e   : > { %p22_p4 = scmp.ge.s32.totalorder %s25_s18, 4  }
 0x570   :  { %24 = sbr.rel (!%p22_p4) target bundleno = 1 (0x1), region = 113 }

</bundles_post_ra>
